<compile_context>
chip_gen: v5e
topology: v5e:2x2
jax: 0.10.0
libtpu: 0.0.40
codegen_flags: <defaults>
</compile_context>

<pallas_src>
import functools
import itertools

import numpy as np
import jax
import jax.numpy as jnp
from jax.experimental import pallas as pl
from jax.experimental.pallas import tpu as pltpu

_LANES = 128
_SUBLANES = 8
_MAX_TILE_ROWS = 128  # 128*128*4B = 64 KiB per slab -> small, safely double-buffered everywhere.

_OPTIMAL_BASES = {
    1: [[2.0]],
    2: [[2.0, 0.0], [1.0, 3.0 ** 0.5]],
    3: [[2.0, 0.0, 0.0], [-1.0, 1.0, 0.0], [0.0, -1.0, 1.0]],
    4: [[1.41421356237, 0.0, 0.0, 0.0],
        [-0.707106781187, 1.22474487139, 0.0, 0.0],
        [0.0, -0.816496580928, 1.15470053838, 0.0],
        [0.0, 0.0, -0.866025403784, 1.11803398875]],
    8: [[2, 0, 0, 0, 0, 0, 0, 0],
        [0, 2, 0, 0, 0, 0, 0, 0],
        [0, 0, 2, 0, 0, 0, 0, 0],
        [0, 0, 0, 2, 0, 0, 0, 0],
        [1, 1, 1, 0, 1, 0, 0, 0],
        [1, 0, 1, 1, 0, 1, 0, 0],
        [1, 0, 0, 1, 1, 0, 1, 0],
        [1, 0, 0, 0, 1, 1, 0, 1]],
}


def _cdiv(a, b):
    return -(-a // b)


def make_basis(n, lattice="optimal"):
    """Normalized lower-triangular lattice basis, mirroring the PyTorch `basis` property."""
    if lattice == "optimal":
        raw = np.asarray(_OPTIMAL_BASES[n], dtype=np.float32)
    else:
        assert lattice == "eye"
        raw = np.eye(n, dtype=np.float32)
    b = np.tril(raw / np.float32(2.0)).astype(np.float32)  # self._basis = basis / 2 ; .tril()
    det = np.abs(np.linalg.det(b)).astype(np.float32)
    return (b / det).astype(np.float32)


def _grid_points(n):
    # Same ordering as torch.cartesian_prod: last coordinate varies fastest.
    return tuple(itertools.product((0.0, 1.0), repeat=n))


def _lvq_kernel(x_ref, xhat_ref, dist_ref, *, basis, grid_pts, n):
    # Per-dimension slabs of shape (TILE_R, 128) -- pure element-wise VPU work.
    x = [x_ref[k] for k in range(n)]

    # Backward substitution against the lower-triangular basis -> floored coords u.
    xt = list(x)
    u = [None] * n
    for i in range(n - 1, -1, -1):
        ui = jnp.floor(xt[i] / jnp.float32(basis[i][i]))
        u[i] = ui
        for j in range(i):
            bij = basis[i][j]
            if bij != 0.0:
                xt[j] = xt[j] - ui * jnp.float32(bij)

    # Precompute coord * basis products for g_m in {0, 1}; shared by all 2^n candidates.
    u1 = [um + jnp.float32(1.0) for um in u]
    prod = [[[None, None] for _ in range(n)] for _ in range(n)]  # prod[m][k][g_m]
    for m in range(n):
        for k in range(n):
            bmk = basis[m][k]
            if bmk != 0.0:
                prod[m][k][0] = u[m] * jnp.float32(bmk)
                prod[m][k][1] = u1[m] * jnp.float32(bmk)

    best_d = None
    best_c = None
    for gi, g in enumerate(grid_pts):
        # Candidate lattice point: c_k = sum_m (u_m + g_m) * basis[m, k].
        c = []
        for k in range(n):
            acc = None
            for m in range(n):
                term = prod[m][k][int(g[m])]
                if term is None:
                    continue
                acc = term if acc is None else acc + term
            c.append(acc if acc is not None else jnp.zeros_like(x[0]))
        d = None
        for k in range(n):
            diff = x[k] - c[k]
            d = diff * diff if d is None else d + diff * diff
        d = d / jnp.float32(n)
        dist_ref[gi] = d
        if best_d is None:
            best_d, best_c = d, c
        else:
            take = d < best_d  # strict '<' == first-occurrence argmin (matches torch.argmin)
            best_c = [jnp.where(take, ck, bk) for ck, bk in zip(c, best_c)]
            best_d = jnp.where(take, d, best_d)

    for k in range(n):
        xhat_ref[k] = best_c[k]


@functools.partial(jax.jit, static_argnames=("training", "lattice", "tile_rows"))
def lattice_vq_forward(x, *, training, lattice="optimal", tile_rows=None):
    """Pallas implementation of LatticeVectorQuantization.forward(x, training)."""
    assert x.ndim == 2
    b_rows, n = x.shape
    basis_np = make_basis(n, lattice)
    basis = tuple(tuple(float(v) for v in row) for row in basis_np)
    grid_pts = _grid_points(n)
    num_cand = len(grid_pts)

    # Lane-dense layout: (B, N) -> dim-major (N, R, 128); B padded up to full tiles.
    r = _cdiv(b_rows, _LANES)
    if tile_rows is None:
        tr = min(_MAX_TILE_ROWS, _cdiv(r, _SUBLANES) * _SUBLANES)
    else:
        tr = max(_SUBLANES, _cdiv(tile_rows, _SUBLANES) * _SUBLANES)
    r_pad = _cdiv(r, tr) * tr
    b_pad = r_pad * _LANES

    xf = x.astype(jnp.float32)
    if b_pad != b_rows:
        xf = jnp.pad(xf, ((0, b_pad - b_rows), (0, 0)))
    xt = xf.T.reshape(n, r_pad, _LANES)

    cost = pl.CostEstimate(
        flops=b_pad * (3 * n * n + num_cand * (4 * n + 1)),
        transcendentals=0,
        bytes_accessed=b_pad * 4 * (2 * n + num_cand),
    )

    xhat_t, dist_t = pl.pallas_call(
        functools.partial(_lvq_kernel, basis=basis, grid_pts=grid_pts, n=n),
        out_shape=(
            jax.ShapeDtypeStruct((n, r_pad, _LANES), jnp.float32),
            jax.ShapeDtypeStruct((num_cand, r_pad, _LANES), jnp.float32),
        ),
        grid=(r_pad // tr,),
        in_specs=[pl.BlockSpec((n, tr, _LANES), lambda i: (0, i, 0))],
        out_specs=(
            pl.BlockSpec((n, tr, _LANES), lambda i: (0, i, 0)),
            pl.BlockSpec((num_cand, tr, _LANES), lambda i: (0, i, 0)),
        ),
        compiler_params=pltpu.CompilerParams(dimension_semantics=("parallel",)),
        cost_estimate=cost,
    )(xt)

    x_hat = xhat_t.reshape(n, b_pad).T[:b_rows].astype(x.dtype)
    dist = dist_t.reshape(num_cand, b_pad).T[:b_rows]

    if training:
        # STE forward value is x_hat.  The PyTorch forward samples voronoi noise here but
        # immediately overwrites it with x_hat, so no RNG is needed on the forward path.
        # TODO(synk): rejection_sampling / sphere_sampling (used only by encode()) not ported.
        return x_hat, x_hat, None
    return x_hat, x_hat, dist


def lattice_vq_reference(x, lattice="optimal"):
    """Pure-JAX (non-Pallas) port of find_nearest, used to validate the kernel."""
    x = x.astype(jnp.float32)
    _, n = x.shape
    basis = jnp.asarray(make_basis(n, lattice))
    grid_pts = jnp.asarray(_grid_points(n), dtype=jnp.float32)  # (2^n, n)

    x_temp = x
    u = [None] * n
    for i in range(n - 1, -1, -1):
        ui = jnp.floor(x_temp[:, i] / basis[i, i])
        u[i] = ui
        if i != 0:
            x_temp = x_temp.at[:, :i].add(-ui[:, None] * basis[i, :i][None, :])
    dot = jnp.stack(u, axis=1)                                       # (B, n)
    coords = dot[:, None, :] + grid_pts[None, :, :]                  # (B, 2^n, n)
    code_book = jnp.sum(coords[:, :, :, None] * basis[None, None, :, :], axis=2)  # (B, 2^n, n)
    d = None
    for k in range(n):
        diff_k = x[:, None, k] - code_book[:, :, k]
        d = diff_k * diff_k if d is None else d + diff_k * diff_k
    dist = d / n
    idx = jnp.argmin(dist, axis=-1)
    x_hat = jnp.take_along_axis(code_book, idx[:, None, None], axis=1)[:, 0, :]
    return x_hat, dist


if __name__ == "__main__":
    key = jax.random.PRNGKey(0)
    k2d, k4d = jax.random.split(key)

    # N=2 "optimal" lattice, 2000 latent vectors (exercises row padding and a multi-step
    # pipelined grid via tile_rows=8 -> grid=(2,)).
    x2 = jax.random.normal(k2d, (2000, 2), dtype=jnp.float32) * 2.0
    x_hat, x_idx, dist = lattice_vq_forward(x2, training=False, tile_rows=8)
    jax.block_until_ready(x_hat)
    ref_hat, ref_dist = lattice_vq_reference(x2)
    assert x_hat.shape == (2000, 2) and dist.shape == (2000, 4)
    assert bool(jnp.allclose(x_hat, ref_hat, atol=1e-4, rtol=1e-4))
    assert bool(jnp.allclose(dist, ref_dist, atol=1e-4, rtol=1e-4))
    assert bool(jnp.all(x_hat == x_idx))

    # Training path: straight-through forward value equals the nearest lattice point.
    tr_hat, tr_idx, tr_dist = lattice_vq_forward(x2, training=True, tile_rows=8)
    jax.block_until_ready(tr_hat)
    assert tr_dist is None
    assert bool(jnp.allclose(tr_hat, ref_hat, atol=1e-4, rtol=1e-4))
    assert bool(jnp.all(tr_hat == tr_idx))

    # N=4 "optimal" lattice (16 candidates), default single-tile tiling.
    x4 = jax.random.normal(k4d, (512, 4), dtype=jnp.float32) * 1.5
    x4_hat, _, dist4 = lattice_vq_forward(x4, training=False)
    jax.block_until_ready(x4_hat)
    ref4_hat, ref4_dist = lattice_vq_reference(x4)
    assert x4_hat.shape == (512, 4) and dist4.shape == (512, 16)
    assert bool(jnp.allclose(x4_hat, ref4_hat, atol=1e-4, rtol=1e-4))
    assert bool(jnp.allclose(dist4, ref4_dist, atol=1e-4, rtol=1e-4))

    print("KERNEL_OK")
</pallas_src>

<mosaic_0001>
module attributes {stable_mosaic.version = 11 : i64} {
  func.func @_lvq_kernel(%arg0: i32, %arg1: memref<2x8x128xf32, #tpu.memory_space<vmem>>, %arg2: memref<2x8x128xf32, #tpu.memory_space<vmem>>, %arg3: memref<4x8x128xf32, #tpu.memory_space<vmem>>) attributes {dimension_semantics = [#tpu.dimension_semantics<parallel>], iteration_bounds = array<i64: 2>, scalar_prefetch = 0 : i64, scratch_operands = 0 : i64, tpu.core_type = #tpu.core_type<tc>, window_params = [{transform_indices = @transform_0, window_bounds = array<i64: 2, 8, 128>}, {transform_indices = @transform_1, window_bounds = array<i64: 2, 8, 128>}, {transform_indices = @transform_2, window_bounds = array<i64: 4, 8, 128>}]} {
    %c0 = arith.constant 0 : index
    %c0_0 = arith.constant 0 : index
    %c0_1 = arith.constant 0 : index
    %0 = vector.load %arg1[%c0, %c0_0, %c0_1] : memref<2x8x128xf32, #tpu.memory_space<vmem>>, vector<1x8x128xf32>
    %1 = vector.shape_cast %0 : vector<1x8x128xf32> to vector<8x128xf32>
    %c1 = arith.constant 1 : index
    %c0_2 = arith.constant 0 : index
    %c0_3 = arith.constant 0 : index
    %2 = vector.load %arg1[%c1, %c0_2, %c0_3] : memref<2x8x128xf32, #tpu.memory_space<vmem>>, vector<1x8x128xf32>
    %3 = vector.shape_cast %2 : vector<1x8x128xf32> to vector<8x128xf32>
    %cst = arith.constant 1.000000e+00 : f32
    %4 = vector.broadcast %cst : f32 to vector<8x128xf32>
    %5 = arith.divf %3, %4 : vector<8x128xf32>
    %6 = math.floor %5 : vector<8x128xf32>
    %cst_4 = arith.constant 0.577350259 : f32
    %7 = vector.broadcast %cst_4 : f32 to vector<8x128xf32>
    %8 = arith.mulf %6, %7 : vector<8x128xf32>
    %9 = arith.subf %1, %8 : vector<8x128xf32>
    %cst_5 = arith.constant 1.15470052 : f32
    %10 = vector.broadcast %cst_5 : f32 to vector<8x128xf32>
    %11 = arith.divf %9, %10 : vector<8x128xf32>
    %12 = math.floor %11 : vector<8x128xf32>
    %cst_6 = arith.constant 1.000000e+00 : f32
    %13 = vector.broadcast %cst_6 : f32 to vector<8x128xf32>
    %14 = arith.addf %12, %13 : vector<8x128xf32>
    %cst_7 = arith.constant 1.000000e+00 : f32
    %15 = vector.broadcast %cst_7 : f32 to vector<8x128xf32>
    %16 = arith.addf %6, %15 : vector<8x128xf32>
    %cst_8 = arith.constant 1.15470052 : f32
    %17 = vector.broadcast %cst_8 : f32 to vector<8x128xf32>
    %18 = arith.mulf %12, %17 : vector<8x128xf32>
    %cst_9 = arith.constant 1.15470052 : f32
    %19 = vector.broadcast %cst_9 : f32 to vector<8x128xf32>
    %20 = arith.mulf %14, %19 : vector<8x128xf32>
    %cst_10 = arith.constant 0.577350259 : f32
    %21 = vector.broadcast %cst_10 : f32 to vector<8x128xf32>
    %22 = arith.mulf %6, %21 : vector<8x128xf32>
    %cst_11 = arith.constant 0.577350259 : f32
    %23 = vector.broadcast %cst_11 : f32 to vector<8x128xf32>
    %24 = arith.mulf %16, %23 : vector<8x128xf32>
    %cst_12 = arith.constant 1.000000e+00 : f32
    %25 = vector.broadcast %cst_12 : f32 to vector<8x128xf32>
    %26 = arith.mulf %6, %25 : vector<8x128xf32>
    %cst_13 = arith.constant 1.000000e+00 : f32
    %27 = vector.broadcast %cst_13 : f32 to vector<8x128xf32>
    %28 = arith.mulf %16, %27 : vector<8x128xf32>
    %29 = arith.addf %18, %22 : vector<8x128xf32>
    %30 = arith.subf %1, %29 : vector<8x128xf32>
    %31 = arith.mulf %30, %30 : vector<8x128xf32>
    %32 = arith.subf %3, %26 : vector<8x128xf32>
    %33 = arith.mulf %32, %32 : vector<8x128xf32>
    %34 = arith.addf %31, %33 : vector<8x128xf32>
    %cst_14 = arith.constant 2.000000e+00 : f32
    %35 = vector.broadcast %cst_14 : f32 to vector<8x128xf32>
    %36 = arith.divf %34, %35 : vector<8x128xf32>
    %c0_15 = arith.constant 0 : index
    %c0_16 = arith.constant 0 : index
    %c0_17 = arith.constant 0 : index
    %37 = vector.load %arg3[%c0_15, %c0_16, %c0_17] : memref<4x8x128xf32, #tpu.memory_space<vmem>>, vector<1x8x128xf32>
    %38 = vector.shape_cast %37 : vector<1x8x128xf32> to vector<8x128xf32>
    %39 = vector.shape_cast %36 : vector<8x128xf32> to vector<1x8x128xf32>
    tpu.vector_store %arg3[%c0_15, %c0_16, %c0_17], %39 {strides = array<i32>} : memref<4x8x128xf32, #tpu.memory_space<vmem>>, vector<1x8x128xf32>,
    %40 = arith.addf %18, %24 : vector<8x128xf32>
    %41 = arith.subf %1, %40 : vector<8x128xf32>
    %42 = arith.mulf %41, %41 : vector<8x128xf32>
    %43 = arith.subf %3, %28 : vector<8x128xf32>
    %44 = arith.mulf %43, %43 : vector<8x128xf32>
    %45 = arith.addf %42, %44 : vector<8x128xf32>
    %cst_18 = arith.constant 2.000000e+00 : f32
    %46 = vector.broadcast %cst_18 : f32 to vector<8x128xf32>
    %47 = arith.divf %45, %46 : vector<8x128xf32>
    %c1_19 = arith.constant 1 : index
    %c0_20 = arith.constant 0 : index
    %c0_21 = arith.constant 0 : index
    %48 = vector.load %arg3[%c1_19, %c0_20, %c0_21] : memref<4x8x128xf32, #tpu.memory_space<vmem>>, vector<1x8x128xf32>
    %49 = vector.shape_cast %48 : vector<1x8x128xf32> to vector<8x128xf32>
    %50 = vector.shape_cast %47 : vector<8x128xf32> to vector<1x8x128xf32>
    tpu.vector_store %arg3[%c1_19, %c0_20, %c0_21], %50 {strides = array<i32>} : memref<4x8x128xf32, #tpu.memory_space<vmem>>, vector<1x8x128xf32>,
    %51 = arith.cmpf olt, %47, %36 : vector<8x128xf32>
    %52 = arith.select %51, %40, %29 : vector<8x128xi1>, vector<8x128xf32>
    %53 = arith.select %51, %28, %26 : vector<8x128xi1>, vector<8x128xf32>
    %54 = arith.select %51, %47, %36 : vector<8x128xi1>, vector<8x128xf32>
    %55 = arith.addf %20, %22 : vector<8x128xf32>
    %56 = arith.subf %1, %55 : vector<8x128xf32>
    %57 = arith.mulf %56, %56 : vector<8x128xf32>
    %58 = arith.subf %3, %26 : vector<8x128xf32>
    %59 = arith.mulf %58, %58 : vector<8x128xf32>
    %60 = arith.addf %57, %59 : vector<8x128xf32>
    %cst_22 = arith.constant 2.000000e+00 : f32
    %61 = vector.broadcast %cst_22 : f32 to vector<8x128xf32>
    %62 = arith.divf %60, %61 : vector<8x128xf32>
    %c2 = arith.constant 2 : index
    %c0_23 = arith.constant 0 : index
    %c0_24 = arith.constant 0 : index
    %63 = vector.load %arg3[%c2, %c0_23, %c0_24] : memref<4x8x128xf32, #tpu.memory_space<vmem>>, vector<1x8x128xf32>
    %64 = vector.shape_cast %63 : vector<1x8x128xf32> to vector<8x128xf32>
    %65 = vector.shape_cast %62 : vector<8x128xf32> to vector<1x8x128xf32>
    tpu.vector_store %arg3[%c2, %c0_23, %c0_24], %65 {strides = array<i32>} : memref<4x8x128xf32, #tpu.memory_space<vmem>>, vector<1x8x128xf32>,
    %66 = arith.cmpf olt, %62, %54 : vector<8x128xf32>
    %67 = arith.select %66, %55, %52 : vector<8x128xi1>, vector<8x128xf32>
    %68 = arith.select %66, %26, %53 : vector<8x128xi1>, vector<8x128xf32>
    %69 = arith.select %66, %62, %54 : vector<8x128xi1>, vector<8x128xf32>
    %70 = arith.addf %20, %24 : vector<8x128xf32>
    %71 = arith.subf %1, %70 : vector<8x128xf32>
    %72 = arith.mulf %71, %71 : vector<8x128xf32>
    %73 = arith.subf %3, %28 : vector<8x128xf32>
    %74 = arith.mulf %73, %73 : vector<8x128xf32>
    %75 = arith.addf %72, %74 : vector<8x128xf32>
    %cst_25 = arith.constant 2.000000e+00 : f32
    %76 = vector.broadcast %cst_25 : f32 to vector<8x128xf32>
    %77 = arith.divf %75, %76 : vector<8x128xf32>
    %c3 = arith.constant 3 : index
    %c0_26 = arith.constant 0 : index
    %c0_27 = arith.constant 0 : index
    %78 = vector.load %arg3[%c3, %c0_26, %c0_27] : memref<4x8x128xf32, #tpu.memory_space<vmem>>, vector<1x8x128xf32>
    %79 = vector.shape_cast %78 : vector<1x8x128xf32> to vector<8x128xf32>
    %80 = vector.shape_cast %77 : vector<8x128xf32> to vector<1x8x128xf32>
    tpu.vector_store %arg3[%c3, %c0_26, %c0_27], %80 {strides = array<i32>} : memref<4x8x128xf32, #tpu.memory_space<vmem>>, vector<1x8x128xf32>,
    %81 = arith.cmpf olt, %77, %69 : vector<8x128xf32>
    %82 = arith.select %81, %70, %67 : vector<8x128xi1>, vector<8x128xf32>
    %83 = arith.select %81, %28, %68 : vector<8x128xi1>, vector<8x128xf32>
    %c0_28 = arith.constant 0 : index
    %c0_29 = arith.constant 0 : index
    %c0_30 = arith.constant 0 : index
    %84 = vector.load %arg2[%c0_28, %c0_29, %c0_30] : memref<2x8x128xf32, #tpu.memory_space<vmem>>, vector<1x8x128xf32>
    %85 = vector.shape_cast %84 : vector<1x8x128xf32> to vector<8x128xf32>
    %86 = vector.shape_cast %82 : vector<8x128xf32> to vector<1x8x128xf32>
    tpu.vector_store %arg2[%c0_28, %c0_29, %c0_30], %86 {strides = array<i32>} : memref<2x8x128xf32, #tpu.memory_space<vmem>>, vector<1x8x128xf32>,
    %c1_31 = arith.constant 1 : index
    %c0_32 = arith.constant 0 : index
    %c0_33 = arith.constant 0 : index
    %87 = vector.load %arg2[%c1_31, %c0_32, %c0_33] : memref<2x8x128xf32, #tpu.memory_space<vmem>>, vector<1x8x128xf32>
    %88 = vector.shape_cast %87 : vector<1x8x128xf32> to vector<8x128xf32>
    %89 = vector.shape_cast %83 : vector<8x128xf32> to vector<1x8x128xf32>
    tpu.vector_store %arg2[%c1_31, %c0_32, %c0_33], %89 {strides = array<i32>} : memref<2x8x128xf32, #tpu.memory_space<vmem>>, vector<1x8x128xf32>,
    return
  }
  func.func @transform_0(%arg0: i32) -> (i32, i32, i32) {
    %c0_i32 = arith.constant 0 : i32
    %c0_i32_0 = arith.constant 0 : i32
    %c0_i32_1 = arith.constant 0 : i32
    return %c0_i32, %arg0, %c0_i32_0 : i32, i32, i32
  }
  func.func @transform_1(%arg0: i32) -> (i32, i32, i32) {
    %c0_i32 = arith.constant 0 : i32
    %c0_i32_0 = arith.constant 0 : i32
    %c0_i32_1 = arith.constant 0 : i32
    return %c0_i32, %arg0, %c0_i32_0 : i32, i32, i32
  }
  func.func @transform_2(%arg0: i32) -> (i32, i32, i32) {
    %c0_i32 = arith.constant 0 : i32
    %c0_i32_0 = arith.constant 0 : i32
    %c0_i32_1 = arith.constant 0 : i32
    return %c0_i32, %arg0, %c0_i32_0 : i32, i32, i32
  }
}

</mosaic_0001>

<bundles_post_ra>
// kernel: lattice_vq_forward.1
= control target key start
LH: loop header
LB: loop body
LE: loop exit
PB: predicated region body
PF: predicated region fallthrough
CT: control target
= control target key end

     0   :  { %s532_s9 = smov 0   ;;  %s534_s10 = smov 0   ;;  %s613_s0 = inlined_call_operand.vmem [shape: f32[2,16,128], index: 0, kind: input, shape index: {}]   ;;  %s614_s1 = inlined_call_operand.vmem [shape: f32[2,16,128], index: 1, kind: output, shape index: {0}]   ;;  %s615_s2 = inlined_call_operand.vmem [shape: f32[4,16,128], index: 2, kind: output, shape index: {1}]  }
   0x1   :  { %s536_s11 = smov 0  }
   0x2 LB: > { %s545_s12 = sadd.s32 4294967295, %s513_s11   ;;  %s547_s13 = sadd.s32 1, %s513_s11   ;;  %s513_s11 = sphi %s536_s11, %s619_s11   ;;  %s509_s10 = sphi %s534_s10, %s618_s10   ;;  %s505_s9 = sphi %s532_s9, %s617_s9  }
   0x3   : > { %s17_s14 = ssub.s32 %s513_s11, %s547_s13  ;;  %s20_s15 = sadd.s32 1, %s509_s10 }
   0x4   : > { %p18_p0 = scmp.eq.s32.totalorder %s17_s14, 0  ;;  %p27_p1 = scmp.ne.s32.totalorder %s509_s10, %s505_s9 }
   0x5   : > { %p28_p2 = scmp.eq.s32.totalorder %s513_s11, 0  ;;  %p57_p3 = scmp.eq.s32.totalorder %s545_s12, 1 }
   0x6   : > { %s555_s16 = scalar_select %p18_p0, %s509_s10, %s20_s15  }
   0x7   : > { %p29_p4 = por %p28_p2, %p27_p1  ;;  %p557_p5 = por %p57_p3, %p27_p1 }
   0x8   : > { %p443_p6 = scmp.ge.s32.totalorder %s513_s11, 2 }
   0xa   : > { %105 = sbr.rel (%p443_p6) target bundleno = 21 (0x15), region = 16 }
   0xf   : > { %108 = sbr.rel (!%p29_p4) target bundleno = 21 (0x15), region = 20  ;;  %s110_s18 = sand.u32 (%p29_p4), 1, %s509_s10  }
  0x10   : > { %s445_s19 = sshll.u32 (%p29_p4), %s513_s11, 3  ;;  %s444_s20 = sshll.u32 (%p29_p4), %s110_s18, 4 }
  0x11   : > { %s114_s23 = scalar_lea.vmem (%p29_p4), %s613_s0, %s445_s19  ;;  %s112_s24 = scalar_lea.vmem (%p29_p4), [#allocation2], %s444_s20 }
  0x12   : > { %v145_v0 = vld [vmem:[%s114_s23] sm:$0xff] (%p29_p4)  ;;  %v147_v1 = vld [vmem:[%s114_s23 + $0x10] sm:$0xff] (%p29_p4) }
  0x13   : > { %146 = vst [vmem:[%s112_s24] sm:$0xff] (%p29_p4), %v145_v0 }
  0x14   : > { %148 = vst [vmem:[%s112_s24 + $0x8] sm:$0xff] %v147_v1 }
  0x15 PF: > { %p446_p7 = scmp.ge.s32.totalorder %s513_s11, 1  ;;  %p153_p8 = scmp.lt.s32.totalorder %s513_s11, 3 }
  0x17   : > { %p154_p9 = pnand %p446_p7, %p153_p8 }
  0x18   : > { %s160_s25 = sand.u32 (!%p154_p9), 1, %s505_s9  }
  0x19   : > { %157 = sbr.rel (%p154_p9) target bundleno = 85 (0x55), region = 58  ;;  %s568_s26 = sshll.u32 (!%p154_p9), %s160_s25, 4 }
  0x1a   : > { %s162_s27 = scalar_lea.vmem (!%p154_p9), [#allocation2], %s568_s26  ;;  %s449_s28 = sshll.u32 (!%p154_p9), %s160_s25, 5 }
  0x1b   : > { %s578_s29 = scalar_lea.vmem (!%p154_p9), [#allocation4], %s449_s28  ;;  %s177_s30 = scalar_lea.vmem (!%p154_p9), [#allocation3], %s568_s26 }
  0x1e   : > { %v515_v2 = vmov 1.1547005   ;;  %v450_v3 = vld [vmem:[%s162_s27 + $0x8] sm:$0xff]  ;;  %v516_v4 = vmov 2.0   ;;  %v184_v10 = vld [vmem:[%s162_s27] sm:$0xff]  ;;  %s457_s3 = sshll.u32 (%p557_p5), %s545_s12, 3 }
  0x1f   : > { %487 = vrcp.f32 %v515_v2  ;;  %v571_v5 = vfloor.f32 %v450_v3  ;;  %s268_s6 = scalar_lea.vmem (%p557_p5), %s614_s1, %s457_s3 }
  0x20   : > { %489 = vrcp.f32 %v516_v4 }
  0x21   : > { %v188_v9 = vmul.f32 0.57735026, %v571_v5  ;;  %v200_v16 = vadd.f32 1.0, %v571_v5  ;;  %v207_v22 = vsub.f32 %v450_v3, %v571_v5 }
  0x23   : > { %v189_v14 = vsub.f32 %v184_v10, %v188_v9  ;;  %v203_v21 = vmul.f32 0.57735026, %v200_v16  ;;  %v222_v24 = vsub.f32 %v450_v3, %v200_v16  ;;  %v208_v30 = vmul.f32 %v207_v22, %v207_v22 }
  0x25   : > { %v488_v6 = vpop.eup %487  ;;  %v223_v32 = vmul.f32 %v222_v24, %v222_v24 }
  0x26   : > { %v191_v7 = vmul.f32 1.1547005, %v488_v6  ;;  %v490_v8 = vpop.eup %489  ;;  %vm195_vm0 = vweird.f32 %v488_v6 }
  0x27   : > { %v211_v13 = vmul.f32 2.0, %v490_v8  ;;  %vm215_vm1 = vweird.f32 %v490_v8 }
  0x28   : > { %v192_v11 = vsub.f32 1.0, %v191_v7 }
  0x29   : > { %v212_v18 = vsub.f32 1.0, %v211_v13 }
  0x2a   : > { %v193_v12 = vmul.f32 %v488_v6, %v192_v11 }
  0x2b   : > { %v213_v23 = vmul.f32 %v490_v8, %v212_v18 }
  0x2c   : > { %v194_v15 = vadd.f32 %v488_v6, %v193_v12 }
  0x2d   : > { %v214_v31 = vadd.f32 %v490_v8, %v213_v23 }
  0x2e   : > { %v196_v17 = vsel %vm195_vm0, %v488_v6, %v194_v15 }
  0x2f   : > { %v197_v19 = vmul.f32 %v196_v17, %v189_v14  ;;  %v216_v41 = vsel %vm215_vm1, %v490_v8, %v214_v31 }
  0x31   : > { %v198_v20 = vfloor.f32 %v197_v19 }
  0x33   : > { %v201_v25 = vmul.f32 1.1547005, %v198_v20  ;;  %v199_v26 = vadd.f32 1.0, %v198_v20 }
  0x35   : > { %v204_v27 = vadd.f32 %v201_v25, %v188_v9  ;;  %v219_v28 = vadd.f32 %v203_v21, %v201_v25  ;;  %v202_v29 = vmul.f32 1.1547005, %v199_v26 }
  0x37   : > { %v205_v33 = vsub.f32 %v184_v10, %v204_v27  ;;  %v220_v34 = vsub.f32 %v184_v10, %v219_v28  ;;  %v232_v35 = vadd.f32 %v202_v29, %v188_v9  ;;  %v243_v36 = vadd.f32 %v203_v21, %v202_v29 }
  0x39   : > { %v206_v37 = vmul.f32 %v205_v33, %v205_v33  ;;  %v221_v38 = vmul.f32 %v220_v34, %v220_v34  ;;  %v233_v39 = vsub.f32 %v184_v10, %v232_v35  ;;  %v244_v40 = vsub.f32 %v184_v10, %v243_v36 }
  0x3b   : > { %v209_v42 = vadd.f32 %v208_v30, %v206_v37  ;;  %v224_v43 = vadd.f32 %v223_v32, %v221_v38  ;;  %v234_v44 = vmul.f32 %v233_v39, %v233_v39  ;;  %v245_v45 = vmul.f32 %v244_v40, %v244_v40 }
  0x3d   : > { %v217_v46 = vmul.f32 %v216_v41, %v209_v42  ;;  %v225_v47 = vmul.f32 %v224_v43, %v216_v41  ;;  %v235_v48 = vadd.f32 %v234_v44, %v208_v30  ;;  %v246_v49 = vadd.f32 %v245_v45, %v223_v32 }
  0x3f   : > { %218 = vst [vmem:[%s578_s29] sm:$0xff] %v217_v46  ;;  %v236_v50 = vmul.f32 %v235_v48, %v216_v41  ;;  %v247_v51 = vmul.f32 %v246_v49, %v216_v41  ;;  %vm228_vm2 = vcmp.lt.f32.partialorder %v225_v47, %v217_v46 }
  0x40   : > { %451 = vst [vmem:[%s578_s29 + $0x8] sm:$0xff] %v225_v47  ;;  %v229_v52 = vsel %vm228_vm2, %v219_v28, %v204_v27  ;;  %v231_v53 = vsel %vm228_vm2, %v225_v47, %v217_v46  ;;  %v230_v54 = vsel %vm228_vm2, %v200_v16, %v571_v5 }
  0x41   : > { %452 = vst [vmem:[%s578_s29 + $0x10] sm:$0xff] %v236_v50  ;;  %vm239_vm3 = vcmp.lt.f32.partialorder %v236_v50, %v231_v53 }
  0x42   : > { %453 = vst [vmem:[%s578_s29 + $0x18] sm:$0xff] %v247_v51  ;;  %v240_v55 = vsel %vm239_vm3, %v232_v35, %v229_v52  ;;  %v242_v56 = vsel %vm239_vm3, %v236_v50, %v231_v53  ;;  %v241_v57 = vsel %vm239_vm3, %v571_v5, %v230_v54  ;;  %266 = sbr.rel (!%p557_p5) target bundleno = 79 (0x4f), region = 66 }
  0x43   : > { %vm250_vm4 = vcmp.lt.f32.partialorder %v247_v51, %v242_v56 }
  0x44   : > { %v251_v58 = vsel %vm250_vm4, %v243_v36, %v240_v55  ;;  %v252_v59 = vsel %vm250_vm4, %v200_v16, %v241_v57 }
  0x45   : > { %253 = vst [vmem:[%s177_s30] sm:$0xff] %v251_v58 }
  0x46   : > { %454 = vst [vmem:[%s177_s30 + $0x8] sm:$0xff] %v252_v59 }
  0x4c   : > { %v299_v60 = vld [vmem:[%s177_s30] sm:$0xff] }
  0x4d   : > { %v301_v61 = vld [vmem:[%s177_s30 + $0x8] sm:$0xff]  ;;  %300 = vst [vmem:[%s268_s6] sm:$0xff] %v299_v60 }
  0x4e   : > { %302 = vst [vmem:[%s268_s6 + $0x10] sm:$0xff] %v301_v61 }
  0x4f PF: > { %308 = sbr.rel (!%p557_p5) target bundleno = 85 (0x55), region = 104  ;;  %s458_s7 = sshll.u32 (%p557_p5), %s545_s12, 3  ;;  %v345_v62 = vld [vmem:[%s578_s29] sm:$0xff] (%p557_p5)  ;;  %v347_v63 = vld [vmem:[%s578_s29 + $0x8] sm:$0xff] (%p557_p5) }
  0x50   : > { %s310_s11 = scalar_lea.vmem (%p557_p5), %s615_s2, %s458_s7  ;;  %v349_v0 = vld [vmem:[%s578_s29 + $0x10] sm:$0xff] (%p557_p5) }
  0x51   : > { %346 = vst [vmem:[%s310_s11] sm:$0xff] (%p557_p5), %v345_v62  ;;  %v351_v1 = vld [vmem:[%s578_s29 + $0x18] sm:$0xff] (%p557_p5) }
  0x52   : > { %348 = vst [vmem:[%s310_s11 + $0x10] sm:$0xff] (%p557_p5), %v347_v63 }
  0x53   : > { %350 = vst [vmem:[%s310_s11 + $0x20] sm:$0xff] (%p557_p5), %v349_v0 }
  0x54   : > { %352 = vst [vmem:[%s310_s11 + $0x30] sm:$0xff] %v351_v1 }
  0x55 PF: > { %p10_p10 = scmp.ge.s32.totalorder %s547_s13, 4   ;;  %s617_s9 = smov %s509_s10 }
  0x56   : > { %s618_s10 = smov %s555_s16  ;;  %s619_s11 = smov %s547_s13 }
  0x57   :  { %12 = sbr.rel (!%p10_p10) target bundleno = 2 (0x2), region = 190 }

</bundles_post_ra>
